<compile_context>
chip_gen: v6e
topology: v6e:2x2x1
jax: 0.10.0
libtpu: 0.0.40
codegen_flags: <defaults>
</compile_context>

<pallas_src>
import functools

import jax
import jax.numpy as jnp
from jax import lax
from jax.experimental import pallas as pl
from jax.experimental.pallas import tpu as pltpu

SIGMA_DATA = 0.5  # sigma_data hyperparameter of the wrapper


def _round_up(x, m):
    return (x + m - 1) // m * m


def _pad2(a, shape):
    return jnp.pad(a, ((0, shape[0] - a.shape[0]), (0, shape[1] - a.shape[1])))


def _vmem_limit_bytes():
    """Generation-aware scoped-VMEM budget (v5e/v6e: ~100 MiB, v7x: ~48 MiB)."""
    try:
        cap = pltpu.get_tpu_info().vmem_capacity_bytes
    except Exception:  # query unavailable -> conservative default
        cap = 128 * 1024 * 1024
    return int(min(100 * 1024 * 1024, cap * 3 // 4))


def _scaling_wrapper_kernel(
    x_ref,     # VMEM (tm, Dp)  x_t rows, native dtype (f32 or bf16)
    coef_ref,  # VMEM (tm, 4)   f32 packed [c_in, c_out, c_skip, log(sigma)]
    w1_ref,    # VMEM (Dp, Hp)  bf16
    b1_ref,    # VMEM (1, Hp)   f32
    semb_ref,  # VMEM (1, Hp)   f32   sigma-embedding vector
    w2_ref,    # VMEM (Hp, Dp)  bf16
    b2_ref,    # VMEM (1, Dp)   f32
    o_ref,     # VMEM (tm, Dp)  native dtype
):
    # f32 working copy of x (skip path must be f32 before the final downcast).
    xf = x_ref[...].astype(jnp.float32)                       # (tm, Dp)

    c = coef_ref[...]                                          # (tm, 4) f32
    c_in, c_out, c_skip, logsig = c[:, 0:1], c[:, 1:2], c[:, 2:3], c[:, 3:4]

    # Karras input scaling; bf16 only at the MXU operand.
    x_in = (xf * c_in).astype(jnp.bfloat16)

    # ---- inner model: MLP with log-sigma conditioning (MXU hot path) ----
    h = jnp.dot(x_in, w1_ref[...], preferred_element_type=jnp.float32)
    h = h + b1_ref[...] + logsig * semb_ref[...]               # f32 VPU
    # TODO(synk): on v6e/v7x cast h to bf16 before the GELU (bf16 VPU/EUP);
    #             kept f32 here so v5e and the f32 reference match tightly.
    h = jax.nn.gelu(h, approximate=True)                       # f32 EUP/VPU

    model_out = jnp.dot(h.astype(jnp.bfloat16), w2_ref[...],
                        preferred_element_type=jnp.float32)
    model_out = model_out + b2_ref[...]

    # ---- fused Karras output combination (f32, single downcast at store) ----
    o_ref[...] = (model_out * c_out + xf * c_skip).astype(o_ref.dtype)


@functools.partial(jax.jit, static_argnames=("tm_max",))
def scaling_wrapper_forward(x_t, sigma, w1, b1, semb, w2, b2, *, tm_max=512):
    B, T, D = x_t.shape
    H = w1.shape[1]
    x_dtype = x_t.dtype

    # Lane-align feature dims (sublane/lane tiling: last dims multiples of 128).
    Dp = _round_up(D, 128)
    Hp = _round_up(H, 128)
    M = B * T

    # Row tile: as large as possible (amortizes ~0.35us/step, fills MXU M dim),
    # but split small problems into >= 2 grid steps so both v7x TCs get work.
    tm = min(tm_max, _round_up(M, 8))
    if M > 8 and tm >= M:
        tm = _round_up((M + 1) // 2, 8)
    nm = (M + tm - 1) // tm
    Mp = nm * tm

    # Activations stream in their ORIGINAL dtype; pad only when required.
    x2 = x_t.reshape(M, D)
    if (Mp, Dp) != (M, D):
        x2 = _pad2(x2, (Mp, Dp))

    # Per-row Karras scalings + log(sigma), packed into one (Mp, 4) f32 array.
    sd2 = jnp.float32(SIGMA_DATA * SIGMA_DATA)
    s = jnp.repeat(sigma.reshape(-1).astype(jnp.float32), T)          # (M,)
    if Mp != M:
        s = jnp.pad(s, (0, Mp - M), constant_values=1.0)              # log stays finite
    denom = s * s + sd2
    inv_sqrt = lax.rsqrt(denom)
    coefs = jnp.stack(
        [inv_sqrt,                               # c_in
         s * jnp.float32(SIGMA_DATA) * inv_sqrt,  # c_out
         sd2 / denom,                            # c_skip
         jnp.log(s)],                            # log(sigma)
        axis=1)                                  # (Mp, 4) f32

    # Padded weights; bf16 MXU operands (halves weight DMA / resident VMEM).
    w1p = _pad2(w1, (Dp, Hp)).astype(jnp.bfloat16)
    w2p = _pad2(w2, (Hp, Dp)).astype(jnp.bfloat16)
    b1p = _pad2(b1, (1, Hp)).astype(jnp.float32)
    sembp = _pad2(semb, (1, Hp)).astype(jnp.float32)
    b2p = _pad2(b2, (1, Dp)).astype(jnp.float32)

    row_spec = pl.BlockSpec((tm, Dp), lambda i: (i, 0))
    coef_spec = pl.BlockSpec((tm, 4), lambda i: (i, 0))

    def const_spec(shape):
        # Constant index_map -> fetched once; single buffer frees weight VMEM.
        return pl.BlockSpec(shape, lambda i: (0, 0), pipeline_mode=pl.Buffered(1))

    x_bytes = jnp.dtype(x_dtype).itemsize
    cost = pl.CostEstimate(
        flops=2 * Mp * (Dp * Hp + Hp * Dp),
        transcendentals=Mp * Hp,                      # gelu tanh per hidden elem
        bytes_accessed=(Mp * Dp * x_bytes             # x read
                        + Mp * Dp * x_bytes           # out write
                        + Mp * 4 * 4                  # packed coefficients
                        + (Dp * Hp + Hp * Dp) * 2     # bf16 weights
                        + (2 * Hp + Dp) * 4),         # biases + sigma embedding
    )

    out = pl.pallas_call(
        _scaling_wrapper_kernel,
        out_shape=jax.ShapeDtypeStruct((Mp, Dp), x_dtype),
        grid=(nm,),
        in_specs=[
            row_spec,                 # x rows (native dtype)
            coef_spec,                # packed [c_in, c_out, c_skip, logsig]
            const_spec((Dp, Hp)),     # w1
            const_spec((1, Hp)),      # b1
            const_spec((1, Hp)),      # semb
            const_spec((Hp, Dp)),     # w2
            const_spec((1, Dp)),      # b2
        ],
        out_specs=row_spec,
        compiler_params=pltpu.CompilerParams(
            dimension_semantics=("parallel",),
            vmem_limit_bytes=_vmem_limit_bytes(),
        ),
        cost_estimate=cost,
    )(x2, coefs, w1p, b1p, sembp, w2p, b2p)

    if (Mp, Dp) != (M, D):
        out = out[:M, :D]
    return out.reshape(B, T, D)


def _reference_forward(x_t, sigma, w1, b1, semb, w2, b2):
    """Pure-JAX f32 reference mirroring the PyTorch forward semantics."""
    sd2 = SIGMA_DATA ** 2
    s = sigma.reshape(-1, 1, 1)
    c_skip = sd2 / (s ** 2 + sd2)
    c_out = s * SIGMA_DATA / jnp.sqrt(s ** 2 + sd2)
    c_in = 1.0 / jnp.sqrt(s ** 2 + sd2)

    x_in = x_t * c_in
    h = jnp.einsum("btd,dh->bth", x_in, w1) + b1 + semb * jnp.log(s)
    h = jax.nn.gelu(h, approximate=True)
    model_out = jnp.einsum("bth,hd->btd", h, w2) + b2
    return model_out * c_out + x_t * c_skip


if __name__ == "__main__":
    B, T, D, H = 4, 64, 32, 64   # B*T = 256 rows -> two 128-row tiles

    key = jax.random.PRNGKey(0)
    kx, ks, k1, k2, k3, k4, k5 = jax.random.split(key, 7)

    x_t = jax.random.normal(kx, (B, T, D), dtype=jnp.float32)
    sigma = jax.random.uniform(ks, (B,), dtype=jnp.float32,
                               minval=0.1, maxval=2.0)

    # Deterministic "inner model" parameters.
    w1 = jax.random.normal(k1, (D, H), dtype=jnp.float32) * 0.05
    b1 = jax.random.normal(k2, (1, H), dtype=jnp.float32) * 0.01
    semb = jax.random.normal(k3, (1, H), dtype=jnp.float32) * 0.01
    w2 = jax.random.normal(k4, (H, D), dtype=jnp.float32) * 0.05
    b2 = jax.random.normal(k5, (1, D), dtype=jnp.float32) * 0.01

    out = scaling_wrapper_forward(x_t, sigma, w1, b1, semb, w2, b2)
    out = jax.block_until_ready(out)

    ref = _reference_forward(x_t, sigma, w1, b1, semb, w2, b2)
    assert out.shape == (B, T, D)
    assert out.dtype == x_t.dtype
    # bf16 MXU operands with f32 accumulation -> looser tolerance than pure f32.
    assert jnp.allclose(out, ref, atol=1e-2, rtol=1e-2), (
        f"max abs err {jnp.max(jnp.abs(out - ref))}")

    print("KERNEL_OK")
</pallas_src>

<mosaic_0001>
module attributes {stable_mosaic.version = 11 : i64} {
  func.func @_scaling_wrapper_kernel(%arg0: i32, %arg1: memref<128x128xf32, #tpu.memory_space<vmem>>, %arg2: memref<128x4xf32, #tpu.memory_space<vmem>>, %arg3: memref<128x128xbf16, #tpu.memory_space<vmem>>, %arg4: memref<1x128xf32, #tpu.memory_space<vmem>>, %arg5: memref<1x128xf32, #tpu.memory_space<vmem>>, %arg6: memref<128x128xbf16, #tpu.memory_space<vmem>>, %arg7: memref<1x128xf32, #tpu.memory_space<vmem>>, %arg8: memref<128x128xf32, #tpu.memory_space<vmem>>) attributes {dimension_semantics = [#tpu.dimension_semantics<parallel>], iteration_bounds = array<i64: 2>, scalar_prefetch = 0 : i64, scratch_operands = 0 : i64, tpu.core_type = #tpu.core_type<tc>, window_params = [{transform_indices = @transform_0, window_bounds = array<i64: 128, 128>}, {transform_indices = @transform_1, window_bounds = array<i64: 128, 4>}, {pipeline_mode = #tpu.pipeline_mode<synchronous>, transform_indices = @transform_2, window_bounds = array<i64: 128, 128>}, {pipeline_mode = #tpu.pipeline_mode<synchronous>, transform_indices = @transform_3, window_bounds = array<i64: 1, 128>}, {pipeline_mode = #tpu.pipeline_mode<synchronous>, transform_indices = @transform_4, window_bounds = array<i64: 1, 128>}, {pipeline_mode = #tpu.pipeline_mode<synchronous>, transform_indices = @transform_5, window_bounds = array<i64: 128, 128>}, {pipeline_mode = #tpu.pipeline_mode<synchronous>, transform_indices = @transform_6, window_bounds = array<i64: 1, 128>}, {transform_indices = @transform_7, window_bounds = array<i64: 128, 128>}]} {
    %c0 = arith.constant 0 : index
    %c0_0 = arith.constant 0 : index
    %0 = vector.load %arg1[%c0, %c0_0] : memref<128x128xf32, #tpu.memory_space<vmem>>, vector<128x128xf32>
    %c0_1 = arith.constant 0 : index
    %c0_2 = arith.constant 0 : index
    %1 = vector.load %arg2[%c0_1, %c0_2] : memref<128x4xf32, #tpu.memory_space<vmem>>, vector<128x4xf32>
    %2 = vector.extract_strided_slice %1 {offsets = [0, 0], sizes = [128, 1], strides = [1, 1]} : vector<128x4xf32> to vector<128x1xf32>
    %3 = vector.extract_strided_slice %1 {offsets = [0, 1], sizes = [128, 1], strides = [1, 1]} : vector<128x4xf32> to vector<128x1xf32>
    %4 = vector.extract_strided_slice %1 {offsets = [0, 2], sizes = [128, 1], strides = [1, 1]} : vector<128x4xf32> to vector<128x1xf32>
    %5 = vector.extract_strided_slice %1 {offsets = [0, 3], sizes = [128, 1], strides = [1, 1]} : vector<128x4xf32> to vector<128x1xf32>
    %6 = vector.broadcast %2 : vector<128x1xf32> to vector<128x128xf32>
    %7 = arith.mulf %0, %6 : vector<128x128xf32>
    %8 = arith.truncf %7 : vector<128x128xf32> to vector<128x128xbf16>
    %c0_3 = arith.constant 0 : index
    %c0_4 = arith.constant 0 : index
    %9 = vector.load %arg3[%c0_3, %c0_4] : memref<128x128xbf16, #tpu.memory_space<vmem>>, vector<128x128xbf16>
    %cst = arith.constant dense<0.000000e+00> : vector<128x128xf32>
    %10 = tpu.matmul %8, %9, %cst {dimension_numbers = #tpu.dot_dimension_numbers<[1], [0], [0], [1], [0, 0, 1, 1], [], []>} : vector<128x128xbf16>, vector<128x128xbf16>, vector<128x128xf32> -> vector<128x128xf32>
    %c0_5 = arith.constant 0 : index
    %c0_6 = arith.constant 0 : index
    %11 = vector.load %arg4[%c0_5, %c0_6] : memref<1x128xf32, #tpu.memory_space<vmem>>, vector<1x128xf32>
    %12 = vector.broadcast %11 : vector<1x128xf32> to vector<128x128xf32>
    %13 = arith.addf %10, %12 : vector<128x128xf32>
    %c0_7 = arith.constant 0 : index
    %c0_8 = arith.constant 0 : index
    %14 = vector.load %arg5[%c0_7, %c0_8] : memref<1x128xf32, #tpu.memory_space<vmem>>, vector<1x128xf32>
    %15 = vector.broadcast %5 : vector<128x1xf32> to vector<128x128xf32>
    %16 = vector.broadcast %14 : vector<1x128xf32> to vector<128x128xf32>
    %17 = arith.mulf %15, %16 : vector<128x128xf32>
    %18 = arith.addf %13, %17 : vector<128x128xf32>
    %19 = arith.mulf %18, %18 : vector<128x128xf32>
    %20 = arith.mulf %18, %19 : vector<128x128xf32>
    %cst_9 = arith.constant 4.471500e-02 : f32
    %21 = vector.broadcast %cst_9 : f32 to vector<128x128xf32>
    %22 = arith.mulf %21, %20 : vector<128x128xf32>
    %23 = arith.addf %18, %22 : vector<128x128xf32>
    %cst_10 = arith.constant 0.797884583 : f32
    %24 = vector.broadcast %cst_10 : f32 to vector<128x128xf32>
    %25 = arith.mulf %24, %23 : vector<128x128xf32>
    %26 = math.tanh %25 : vector<128x128xf32>
    %cst_11 = arith.constant 1.000000e+00 : f32
    %27 = vector.broadcast %cst_11 : f32 to vector<128x128xf32>
    %28 = arith.addf %27, %26 : vector<128x128xf32>
    %cst_12 = arith.constant 5.000000e-01 : f32
    %29 = vector.broadcast %cst_12 : f32 to vector<128x128xf32>
    %30 = arith.mulf %29, %28 : vector<128x128xf32>
    %31 = arith.mulf %18, %30 : vector<128x128xf32>
    %32 = arith.truncf %31 : vector<128x128xf32> to vector<128x128xbf16>
    %c0_13 = arith.constant 0 : index
    %c0_14 = arith.constant 0 : index
    %33 = vector.load %arg6[%c0_13, %c0_14] : memref<128x128xbf16, #tpu.memory_space<vmem>>, vector<128x128xbf16>
    %cst_15 = arith.constant dense<0.000000e+00> : vector<128x128xf32>
    %34 = tpu.matmul %32, %33, %cst_15 {dimension_numbers = #tpu.dot_dimension_numbers<[1], [0], [0], [1], [0, 0, 1, 1], [], []>} : vector<128x128xbf16>, vector<128x128xbf16>, vector<128x128xf32> -> vector<128x128xf32>
    %c0_16 = arith.constant 0 : index
    %c0_17 = arith.constant 0 : index
    %35 = vector.load %arg7[%c0_16, %c0_17] : memref<1x128xf32, #tpu.memory_space<vmem>>, vector<1x128xf32>
    %36 = vector.broadcast %35 : vector<1x128xf32> to vector<128x128xf32>
    %37 = arith.addf %34, %36 : vector<128x128xf32>
    %38 = vector.broadcast %3 : vector<128x1xf32> to vector<128x128xf32>
    %39 = arith.mulf %37, %38 : vector<128x128xf32>
    %40 = vector.broadcast %4 : vector<128x1xf32> to vector<128x128xf32>
    %41 = arith.mulf %0, %40 : vector<128x128xf32>
    %42 = arith.addf %39, %41 : vector<128x128xf32>
    %c0_18 = arith.constant 0 : index
    %c0_19 = arith.constant 0 : index
    %43 = vector.load %arg8[%c0_18, %c0_19] : memref<128x128xf32, #tpu.memory_space<vmem>>, vector<128x128xf32>
    tpu.vector_store %arg8[%c0_18, %c0_19], %42 {strides = array<i32>} : memref<128x128xf32, #tpu.memory_space<vmem>>, vector<128x128xf32>,
    return
  }
  func.func @transform_0(%arg0: i32) -> (i32, i32) {
    %c0_i32 = arith.constant 0 : i32
    %c0_i32_0 = arith.constant 0 : i32
    return %arg0, %c0_i32 : i32, i32
  }
  func.func @transform_1(%arg0: i32) -> (i32, i32) {
    %c0_i32 = arith.constant 0 : i32
    %c0_i32_0 = arith.constant 0 : i32
    return %arg0, %c0_i32 : i32, i32
  }
  func.func @transform_2(%arg0: i32) -> (i32, i32) {
    %c0_i32 = arith.constant 0 : i32
    %c0_i32_0 = arith.constant 0 : i32
    %c0_i32_1 = arith.constant 0 : i32
    return %c0_i32, %c0_i32_0 : i32, i32
  }
  func.func @transform_3(%arg0: i32) -> (i32, i32) {
    %c0_i32 = arith.constant 0 : i32
    %c0_i32_0 = arith.constant 0 : i32
    %c0_i32_1 = arith.constant 0 : i32
    return %c0_i32, %c0_i32_0 : i32, i32
  }
  func.func @transform_4(%arg0: i32) -> (i32, i32) {
    %c0_i32 = arith.constant 0 : i32
    %c0_i32_0 = arith.constant 0 : i32
    %c0_i32_1 = arith.constant 0 : i32
    return %c0_i32, %c0_i32_0 : i32, i32
  }
  func.func @transform_5(%arg0: i32) -> (i32, i32) {
    %c0_i32 = arith.constant 0 : i32
    %c0_i32_0 = arith.constant 0 : i32
    %c0_i32_1 = arith.constant 0 : i32
    return %c0_i32, %c0_i32_0 : i32, i32
  }
  func.func @transform_6(%arg0: i32) -> (i32, i32) {
    %c0_i32 = arith.constant 0 : i32
    %c0_i32_0 = arith.constant 0 : i32
    %c0_i32_1 = arith.constant 0 : i32
    return %c0_i32, %c0_i32_0 : i32, i32
  }
  func.func @transform_7(%arg0: i32) -> (i32, i32) {
    %c0_i32 = arith.constant 0 : i32
    %c0_i32_0 = arith.constant 0 : i32
    return %arg0, %c0_i32 : i32, i32
  }
}

</mosaic_0001>

<bundles_post_ra>
// kernel: mul.31
= control target key start
LH: loop header
LB: loop body
LE: loop exit
PB: predicated region body
PF: predicated region fallthrough
CT: control target
= control target key end

     0   :  { %s56_s0 = inlined_call_operand.vmem [shape: f32[256,1], index: 0, kind: input, shape index: {}]   ;;  %s57_s1 = inlined_call_operand.vmem [shape: f32[256,1], index: 1, kind: input, shape index: {}]   ;;  %s58_s2 = inlined_call_operand.vmem [shape: f32[256,1], index: 2, kind: output, shape index: {}]  }
   0x1   :  { %v3_v0 = vld [vmem:[%s56_s0] sm:$0x1]  ;;  %v20_v2 = vld [vmem:[%s56_s0 + $0x1] sm:$0x1] }
   0x2   :  { %v4_v1 = vld [vmem:[%s57_s1] sm:$0x1]  ;;  %v21_v4 = vld [vmem:[%s57_s1 + $0x1] sm:$0x1] }
   0x3   :  { %v7_v3 = vmul.f32 %v4_v1, %v3_v0  ;;  %v16_v5 = vmul.f32 %v21_v4, %v20_v2 }
   0x5   :  { %9 = vst [vmem:[%s58_s2] sm:$0x1] %v7_v3  ;;  %22 = vst [vmem:[%s58_s2 + $0x1] sm:$0x1] %v16_v5 }

// kernel: scaling_wrapper_forward.1
= control target key start
LH: loop header
LB: loop body
LE: loop exit
PB: predicated region body
PF: predicated region fallthrough
CT: control target
= control target key end

     0   :  { %s1540_s24 = smov 0   ;;  %s2029_s0 = inlined_call_operand.vmem [shape: f32[256,128], index: 0, kind: input, shape index: {}]   ;;  %s2030_s1 = inlined_call_operand.vmem [shape: f32[256,4], index: 1, kind: input, shape index: {}]   ;;  %s2031_s2 = inlined_call_operand.vmem [shape: bf16[128,128], index: 2, kind: input, shape index: {}]   ;;  %s2032_s3 = inlined_call_operand.vmem [shape: f32[1,128], index: 3, kind: input, shape index: {}]   ;;  %s2033_s4 = inlined_call_operand.vmem [shape: f32[1,128], index: 4, kind: input, shape index: {}]   ;;  %s2034_s5 = inlined_call_operand.vmem [shape: bf16[128,128], index: 5, kind: input, shape index: {}]   ;;  %s2035_s6 = inlined_call_operand.vmem [shape: f32[1,128], index: 6, kind: input, shape index: {}]   ;;  %s2036_s7 = inlined_call_operand.vmem [shape: f32[256,128], index: 7, kind: output, shape index: {}]  }
   0x1 LB: > { %s1292_s25 = sadd.s32 4294967295, %s1494_s24   ;;  %p1296_p0 = scmp.ge.s32.totalorder %s1494_s24, 1  ;;  %s1494_s24 = sphi %s1540_s24, %s17_s24  }
   0x2   : > { %p249_p1 = scmp.lt.s32.totalorder %s1494_s24, 3 }
   0x4   : > { %p250_p2 = pnand %p1296_p0, %p249_p1 }
   0x5   : > { %s1297_s26 = sshll.u32 (!%p250_p2), %s1292_s25, 4 }
   0x6   : > { %253 = sbr.rel (%p250_p2) target bundleno = 618 (0x26a), region = 48  ;;  %p287_p3 = scmp.lt.s32.totalorder (!%p250_p2), %s1297_s26, 31 }
   0xb   : > { %v1496_v0 = vmov 0   ;;  %v1440_v1 = vld [vmem:[%s2031_s2 + $0x38] sm:$0xff]   ;;  %v1441_v2 = vld [vmem:[%s2031_s2 + $0x30] sm:$0xff]   ;;  %s2038_s26 = smov (!%p287_p3, %s1297_s26), 31  ;;  %v1442_v3 = vld [vmem:[%s2031_s2 + $0x28] sm:$0xff]   ;;  %v1497_v25 = vmov 3  }
   0xc   : > { %1433 = vset.pattern.permute.xlu1 %v1496_v0  ;;  %1432 = vset.pattern.permute.xlu0 %v1496_v0  ;;  %s1554_s8 = sshll.u32 %s2038_s26, 3  ;;  %v1443_v8 = vld [vmem:[%s2031_s2 + $0x20] sm:$0xff]   ;;  %v1444_v11 = vld [vmem:[%s2031_s2 + $0x18] sm:$0xff]   ;;  %v1445_v14 = vld [vmem:[%s2031_s2 + $0x10] sm:$0xff]  }
   0xd   : > { %1356 = vmatprep.subr.bf16.mxu0 %v1440_v1  ;;  %s1560_s11 = scalar_lea.vmem %s2030_s1, %s1554_s8  ;;  %v1446_v17 = vld [vmem:[%s2031_s2 + $0x8] sm:$0xff]   ;;  %v1447_v20 = vld [vmem:[%s2031_s2] sm:$0xff]   ;;  %s1664_s27 = scalar_lea.vmem %s2029_s0, %s1554_s8 }
   0xe   : > { %1357 = vmatpush3.bf16.msra.mxu0 %v1440_v1  ;;  %v1566_v4 = vld [vmem:[%s1560_s11 + $0x10] sm:$0xff]  ;;  %v1569_v5 = vld [vmem:[%s1560_s11] sm:$0xff]  ;;  %v1574_v6 = vld [vmem:[%s1560_s11 + $0x18] sm:$0xff]  ;;  %s1971_s9 = scalar_lea.vmem %s2036_s7, %s1554_s8 }
   0xf   : > { %1358 = vmatprep.subr.bf16.mxu0 %v1441_v2  ;;  %349 = vperm.xlu1 %1433, %v1566_v4   ;;  %v1577_v7 = vld [vmem:[%s1560_s11 + $0x8] sm:$0xff]  ;;  %v1588_v10 = vld [vmem:[%s1560_s11 + $0x20] sm:$0xff]  ;;  %v1594_v12 = vld [vmem:[%s1560_s11 + $0x38] sm:$0xff] }
  0x10   : > { %339 = vperm.xlu0 %1432, %v1569_v5   ;;  %v1585_v9 = vld [vmem:[%s1560_s11 + $0x28] sm:$0xff]  ;;  %v1599_v13 = vld [vmem:[%s1560_s11 + $0x30] sm:$0xff]  ;;  %v1608_v16 = vld [vmem:[%s1560_s11 + $0x40] sm:$0xff] }
  0x11   : > { %v1605_v15 = vld [vmem:[%s1560_s11 + $0x48] sm:$0xff]  ;;  %v1618_v18 = vld [vmem:[%s1560_s11 + $0x58] sm:$0xff]  ;;  %v1621_v19 = vld [vmem:[%s1560_s11 + $0x50] sm:$0xff] }
  0x12   : > { %1359 = vmatpush3.bf16.msra.mxu0 %v1441_v2  ;;  %v1629_v21 = vld [vmem:[%s1560_s11 + $0x68] sm:$0xff]  ;;  %v1632_v22 = vld [vmem:[%s1560_s11 + $0x60] sm:$0xff]  ;;  %v1637_v23 = vld [vmem:[%s1560_s11 + $0x78] sm:$0xff] }
  0x13   : > { %1360 = vmatprep.subr.bf16.mxu0 %v1442_v3  ;;  %354 = vperm.xlu1 %1433, %v1574_v6   ;;  %v1640_v24 = vld [vmem:[%s1560_s11 + $0x70] sm:$0xff]  ;;  %v1670_v29 = vld [vmem:[%s1664_s27] sm:$0xff]  ;;  %v1673_v30 = vld [vmem:[%s1664_s27 + $0x18] sm:$0xff] }
  0x14   : > { %344 = vperm.xlu0 %1432, %v1577_v7   ;;  %v1667_v28 = vld [vmem:[%s1664_s27 + $0x10] sm:$0xff]  ;;  %v1676_v31 = vld [vmem:[%s1664_s27 + $0x8] sm:$0xff]  ;;  %v1686_v39 = vld [vmem:[%s1664_s27 + $0x20] sm:$0xff] }
  0x15   : > { %v1683_v38 = vld [vmem:[%s1664_s27 + $0x28] sm:$0xff]  ;;  %v1691_v46 = vld [vmem:[%s1664_s27 + $0x38] sm:$0xff]  ;;  %v1694_v47 = vld [vmem:[%s1664_s27 + $0x30] sm:$0xff] }
  0x16   : > { %1361 = vmatpush3.bf16.msra.mxu0 %v1442_v3  ;;  %v1699_v53 = vld [vmem:[%s1664_s27 + $0x48] sm:$0xff]  ;;  %v1702_v54 = vld [vmem:[%s1664_s27 + $0x40] sm:$0xff]  ;;  %v1707_v60 = vld [vmem:[%s1664_s27 + $0x58] sm:$0xff] }
  0x17   : > { %1362 = vmatprep.subr.bf16.mxu0 %v1443_v8  ;;  %364 = vperm.xlu1 %1433, %v1585_v9   ;;  %v1710_v61 = vld [vmem:[%s1664_s27 + $0x50] sm:$0xff]  ;;  %v1715_v3 = vld [vmem:[%s1664_s27 + $0x68] sm:$0xff] }
  0x18   : > { %359 = vperm.xlu0 %1432, %v1588_v10  }
  0x1a   : > { %1363 = vmatpush3.bf16.msra.mxu0 %v1443_v8  ;;  %v1718_v8 = vld [vmem:[%s1664_s27 + $0x60] sm:$0xff] }
  0x1b   : > { %1364 = vmatprep.subr.bf16.mxu0 %v1444_v11  ;;  %374 = vperm.xlu1 %1433, %v1594_v12  }
  0x1c   : > { %369 = vperm.xlu0 %1432, %v1599_v13  }
  0x1e   : > { %1365 = vmatpush3.bf16.msra.mxu0 %v1444_v11 }
  0x1f   : > { %1366 = vmatprep.subr.bf16.mxu0 %v1445_v14  ;;  %384 = vperm.xlu1 %1433, %v1605_v15  }
  0x20   : > { %379 = vperm.xlu0 %1432, %v1608_v16  }
  0x22   : > { %1367 = vmatpush3.bf16.msra.mxu0 %v1445_v14 }
  0x23   : > { %1368 = vmatprep.subr.bf16.mxu0 %v1446_v17  ;;  %394 = vperm.xlu1 %1433, %v1618_v18  }
  0x24   : > { %389 = vperm.xlu0 %1432, %v1621_v19  }
  0x26   : > { %1369 = vmatpush3.bf16.msra.mxu0 %v1446_v17 }
  0x27   : > { %1370 = vmatprep.subr.bf16.mxu0 %v1447_v20  ;;  %404 = vperm.xlu1 %1433, %v1629_v21  }
  0x28   : > { %399 = vperm.xlu0 %1432, %v1632_v22  }
  0x2a   : > { %1371 = vmatpush3.bf16.msra.mxu0 %v1447_v20 }
  0x2b   : > { %414 = vperm.xlu1 %1433, %v1637_v23  }
  0x2c   : > { %409 = vperm.xlu0 %1432, %v1640_v24  }
  0x2f   : > { %1435 = vset.pattern.permute.xlu1 %v1497_v25 }
  0x30   : > { %1434 = vset.pattern.permute.xlu0 %v1497_v25  ;;  %615 = vperm.xlu1 %1435, %v1577_v7  }
  0x31   : > { %611 = vperm.xlu0 %1434, %v1569_v5  }
  0x34   : > { %619 = vperm.xlu1 %1435, %v1566_v4  }
  0x35   : > { %623 = vperm.xlu0 %1434, %v1574_v6  }
  0x38   : > { %627 = vperm.xlu1 %1435, %v1588_v10  }
  0x39   : > { %631 = vperm.xlu0 %1434, %v1585_v9  }
  0x3c   : > { %635 = vperm.xlu1 %1435, %v1599_v13  }
  0x3d   : > { %639 = vperm.xlu0 %1434, %v1594_v12  }
  0x40   : > { %643 = vperm.xlu1 %1435, %v1608_v16  }
  0x41   : > { %647 = vperm.xlu0 %1434, %v1605_v15  }
  0x44   : > { %651 = vperm.xlu1 %1435, %v1621_v19  }
  0x45   : > { %655 = vperm.xlu0 %1434, %v1618_v18  }
  0x48   : > { %659 = vperm.xlu1 %1435, %v1632_v22  }
  0x49   : > { %663 = vperm.xlu0 %1434, %v1629_v21  }
  0x4c   : > { %667 = vperm.xlu1 %1435, %v1640_v24  }
  0x4d   : > { %671 = vperm.xlu0 %1434, %v1637_v23  }
  0x8a   : > { %v350_v26 = vpop.permute.xlu1 %349 }
  0x8b   : > { %v340_v27 = vpop.permute.xlu0 %339  ;;  %v419_v34 = vmul.f32 %v350_v26, %v1667_v28  ;;  %v1723_v26 = vld [vmem:[%s1664_s27 + $0x78] sm:$0xff] }
  0x8c   : > { %v417_v35 = vmul.f32 %v340_v27, %v1670_v29  ;;  %v1726_v27 = vld [vmem:[%s1664_s27 + $0x70] sm:$0xff] }
  0x8e   : > { %v355_v32 = vpop.permute.xlu1 %354 }
  0x8f   : > { %v345_v33 = vpop.permute.xlu0 %344  ;;  %v420_v36 = vmul.f32 %v355_v32, %v1673_v30 }
  0x90   : > { %v418_v37 = vmul.f32 %v345_v33, %v1676_v31 }
  0x91   : > { %v434_v40 = vpack.c.bf16 %v420_v36, %v419_v34 }
  0x92   : > { %v433_v41 = vpack.c.bf16 %v418_v37, %v417_v35  ;;  %v365_v42 = vpop.permute.xlu1 %364 }
  0x93   : > { %v360_v43 = vpop.permute.xlu0 %359  ;;  %v422_v44 = vmul.f32 %v365_v42, %v1683_v38  ;;  %v1450_v42 = vld [vmem:[%s2034_s5 + $0x28] sm:$0xff]  }
  0x94   : > { %v421_v45 = vmul.f32 %v360_v43, %v1686_v39  ;;  %1372 = vmatprep.mubr.bf16.mxu0 %v433_v41  ;;  %v1449_v41 = vld [vmem:[%s2034_s5 + $0x30] sm:$0xff]   ;;  %v1451_v43 = vld [vmem:[%s2034_s5 + $0x20] sm:$0xff]  }
  0x95   : > { %1373 = vmatmul.mubr.bf16.vlgmr.msra.gmra.mxu0 %v434_v40  ;;  %v1448_v40 = vld [vmem:[%s2034_s5 + $0x38] sm:$0xff]  }
  0x96   : > { %v435_v48 = vpack.c.bf16 %v422_v44, %v421_v45  ;;  %v375_v49 = vpop.permute.xlu1 %374  ;;  %1388 = vmatprep.subr.bf16.mxu1 %v1448_v40  ;;  %v1452_v44 = vld [vmem:[%s2034_s5 + $0x18] sm:$0xff]   ;;  %v1453_v45 = vld [vmem:[%s2034_s5 + $0x10] sm:$0xff]  }
  0x97   : > { %v370_v50 = vpop.permute.xlu0 %369  ;;  %v424_v51 = vmul.f32 %v375_v49, %v1691_v46  ;;  %1389 = vmatpush3.bf16.msra.mxu1 %v1448_v40  ;;  %v1455_v49 = vld [vmem:[%s2034_s5] sm:$0xff]  }
  0x98   : > { %v423_v52 = vmul.f32 %v370_v50, %v1694_v47  ;;  %1376 = vmatprep.mubr.bf16.mxu0 %v435_v48  ;;  %1390 = vmatprep.subr.bf16.mxu1 %v1449_v41  ;;  %v1454_v48 = vld [vmem:[%s2034_s5 + $0x8] sm:$0xff]   ;;  %v1498_v50 = vmov 1  }
  0x99   : > { %1436 = vset.pattern.permute.xlu1 %v1498_v50  ;;  %1437 = vset.pattern.permute.xlu0 %v1498_v50 }
  0x9a   : > { %v436_v55 = vpack.c.bf16 %v424_v51, %v423_v52  ;;  %v385_v56 = vpop.permute.xlu1 %384  ;;  %1033 = vperm.xlu1 %1436, %v1569_v5   ;;  %1037 = vperm.xlu0 %1437, %v1577_v7   ;;  %v1499_v51 = vmov 2  }
  0x9b   : > { %v380_v57 = vpop.permute.xlu0 %379  ;;  %v426_v58 = vmul.f32 %v385_v56, %v1699_v53  ;;  %1391 = vmatpush3.bf16.msra.mxu1 %v1449_v41 }
  0x9c   : > { %v425_v59 = vmul.f32 %v380_v57, %v1702_v54  ;;  %1392 = vmatprep.subr.bf16.mxu1 %v1450_v42 }
  0x9d   : > { %1377 = vmatmul.mubr.bf16.gmra.mxu0 %v436_v55 }
  0x9e   : > { %v437_v62 = vpack.c.bf16 %v426_v58, %v425_v59  ;;  %v395_v63 = vpop.permute.xlu1 %394  ;;  %1041 = vperm.xlu1 %1436, %v1566_v4   ;;  %1049 = vperm.xlu0 %1437, %v1588_v10  }
  0x9f   : > { %v390_v0 = vpop.permute.xlu0 %389  ;;  %v428_v1 = vmul.f32 %v395_v63, %v1707_v60  ;;  %1393 = vmatpush3.bf16.msra.mxu1 %v1450_v42 }
  0xa0   : > { %v427_v2 = vmul.f32 %v390_v0, %v1710_v61  ;;  %1380 = vmatprep.mubr.bf16.mxu0 %v437_v62  ;;  %1394 = vmatprep.subr.bf16.mxu1 %v1451_v43 }
  0xa2   : > { %v438_v11 = vpack.c.bf16 %v428_v1, %v427_v2  ;;  %v405_v14 = vpop.permute.xlu1 %404  ;;  %1045 = vperm.xlu1 %1436, %v1574_v6   ;;  %1057 = vperm.xlu0 %1437, %v1599_v13  }
  0xa3   : > { %v400_v17 = vpop.permute.xlu0 %399  ;;  %v430_v20 = vmul.f32 %v405_v14, %v1715_v3  ;;  %1395 = vmatpush3.bf16.msra.mxu1 %v1451_v43 }
  0xa4   : > { %v429_v25 = vmul.f32 %v400_v17, %v1718_v8  ;;  %1396 = vmatprep.subr.bf16.mxu1 %v1452_v44 }
  0xa5   : > { %1381 = vmatmul.mubr.bf16.gmra.mxu0 %v438_v11 }
  0xa6   : > { %v439_v32 = vpack.c.bf16 %v430_v20, %v429_v25  ;;  %v415_v33 = vpop.permute.xlu1 %414  ;;  %1053 = vperm.xlu1 %1436, %v1585_v9   ;;  %1065 = vperm.xlu0 %1437, %v1608_v16  }
  0xa7   : > { %v410_v34 = vpop.permute.xlu0 %409  ;;  %v432_v35 = vmul.f32 %v415_v33, %v1723_v26  ;;  %1397 = vmatpush3.bf16.msra.mxu1 %v1452_v44 }
  0xa8   : > { %v431_v36 = vmul.f32 %v410_v34, %v1726_v27  ;;  %1384 = vmatprep.mubr.bf16.mxu0 %v439_v32  ;;  %1398 = vmatprep.subr.bf16.mxu1 %v1453_v45 }
  0xaa   : > { %v440_v37 = vpack.c.bf16 %v432_v35, %v431_v36  ;;  %1061 = vperm.xlu1 %1436, %v1594_v12   ;;  %1073 = vperm.xlu0 %1437, %v1621_v19  }
  0xab   : > { %1399 = vmatpush3.bf16.msra.mxu1 %v1453_v45  ;;  %v616_v52 = vpop.permute.xlu1 %615 }
  0xac   : > { %1400 = vmatprep.subr.bf16.mxu1 %v1454_v48  ;;  %v612_v55 = vpop.permute.xlu0 %611 }
  0xad   : > { %1385 = vmatmul.mubr.bf16.gmra.mxu0 %v440_v37 }
  0xae   : > { %1069 = vperm.xlu1 %1436, %v1605_v15   ;;  %1081 = vperm.xlu0 %1437, %v1632_v22  }
  0xaf   : > { %1401 = vmatpush3.bf16.msra.mxu1 %v1454_v48 }
  0xb0   : > { %1402 = vmatprep.subr.bf16.mxu1 %v1455_v49 }
  0xb2   : > { %1077 = vperm.xlu1 %1436, %v1618_v18   ;;  %1089 = vperm.xlu0 %1437, %v1640_v24  }
  0xb3   : > { %1403 = vmatpush3.bf16.msra.mxu1 %v1455_v49 }
  0xb6   : > { %1085 = vperm.xlu1 %1436, %v1629_v21   ;;  %1438 = vset.pattern.permute.xlu0 %v1499_v51 }
  0xb7   : > { %1113 = vperm.xlu0 %1438, %v1569_v5   ;;  %v620_v5 = vpop.permute.xlu1 %619 }
  0xba   : > { %1093 = vperm.xlu1 %1436, %v1637_v23  }
  0xbb   : > { %1125 = vperm.xlu0 %1438, %v1574_v6   ;;  %v624_v6 = vpop.permute.xlu0 %623 }
  0xbe   : > { %1439 = vset.pattern.permute.xlu1 %v1499_v51 }
  0xbf   : > { %1117 = vperm.xlu1 %1439, %v1577_v7   ;;  %1133 = vperm.xlu0 %1438, %v1585_v9   ;;  %v632_v7 = vpop.permute.xlu0 %631 }
  0xc3   : > { %1121 = vperm.xlu1 %1439, %v1566_v4   ;;  %1141 = vperm.xlu0 %1438, %v1594_v12   ;;  %v628_v4 = vpop.permute.xlu1 %627 }
  0xc7   : > { %1129 = vperm.xlu1 %1439, %v1588_v10   ;;  %1149 = vperm.xlu0 %1438, %v1605_v15   ;;  %v636_v9 = vpop.permute.xlu1 %635  ;;  %v640_v10 = vpop.permute.xlu0 %639  ;;  %v1312_v15 = vld [vmem:[%s2033_s4] ss:$0 sm:$0xff] }
  0xc8   : > { %v683_v57 = vmul.f32 %v1312_v15, %v624_v6  ;;  %v681_v14 = vmul.f32 %v1312_v15, %v616_v52  ;;  %v684_v17 = vmul.f32 %v1312_v15, %v628_v4  ;;  %v685_v20 = vmul.f32 %v1312_v15, %v632_v7 }
  0xc9   : > { %v686_v36 = vmul.f32 %v1312_v15, %v636_v9  ;;  %v687_v37 = vmul.f32 %v1312_v15, %v640_v10 }
  0xcb   : > { %1137 = vperm.xlu1 %1439, %v1599_v13   ;;  %1157 = vperm.xlu0 %1438, %v1618_v18   ;;  %v644_v12 = vpop.permute.xlu1 %643  ;;  %v648_v13 = vpop.permute.xlu0 %647  ;;  %v1792_v18 = vld [vmem:[%s2032_s3] ss:$0 sm:$0xff] }
  0xcc   : > { %v1809_v40 = vmul.f32 %v1312_v15, %v644_v12  ;;  %v1811_v41 = vmul.f32 %v1312_v15, %v648_v13 }
  0xcf   : > { %1145 = vperm.xlu1 %1439, %v1608_v16   ;;  %1165 = vperm.xlu0 %1438, %v1629_v21   ;;  %v652_v16 = vpop.permute.xlu1 %651  ;;  %v656_v21 = vpop.permute.xlu0 %655 }
  0xd0   : > { %v690_v50 = vmul.f32 %v1312_v15, %v652_v16  ;;  %v691_v51 = vmul.f32 %v1312_v15, %v656_v21 }
  0xd3   : > { %1153 = vperm.xlu1 %1439, %v1621_v19   ;;  %1173 = vperm.xlu0 %1438, %v1637_v23   ;;  %v682_v19 = vmul.f32 %v1312_v15, %v620_v5  ;;  %v660_v58 = vpop.permute.xlu1 %659  ;;  %v664_v0 = vpop.permute.xlu0 %663 }
  0xd4   : > { %v1818_v52 = vmul.f32 %v1312_v15, %v660_v58  ;;  %v1826_v12 = vmul.f32 %v1312_v15, %v664_v0 }
  0xd7   : > { %1161 = vperm.xlu1 %1439, %v1632_v22   ;;  %v680_v22 = vmul.f32 %v1312_v15, %v612_v55  ;;  %v668_v45 = vpop.permute.xlu1 %667  ;;  %v672_v4 = vpop.permute.xlu0 %671 }
  0xd8   : > { %v1828_v13 = vmul.f32 %v1312_v15, %v668_v45 }
  0xdb   : > { %1169 = vperm.xlu1 %1439, %v1640_v24  }
 0x155   : > { %v1374_v23 = vpop.f32.mrf.mxu0 }
 0x156   : > { %v555_v56 = vadd.f32 %v1374_v23, %v1792_v18 }
 0x157   : > { %v546_v24 = vpop.f32.mrf.mxu0 }
 0x158   : > { %v1795_v59 = vadd.f32 %v682_v19, %v555_v56  ;;  %v547_v62 = vadd.f32 %v1792_v18, %v546_v24 }
 0x159   : > { %v1375_v63 = vpop.f32.mrf.mxu0 }
 0x15a   : > { %v714_v1 = vmul.f32 %v1795_v59, %v1795_v59  ;;  %v1800_v2 = vadd.f32 %v680_v22, %v547_v62  ;;  %v558_v11 = vadd.f32 %v1375_v63, %v1792_v18 }
 0x15b   : > { %v549_v25 = vpop.f32.mrf.mxu0 }
 0x15c   : > { %v730_v32 = vmul.f32 %v714_v1, %v1795_v59  ;;  %v712_v33 = vmul.f32 %v1800_v2, %v1800_v2  ;;  %v1806_v34 = vadd.f32 %v683_v57, %v558_v11  ;;  %v550_v35 = vadd.f32 %v1792_v18, %v549_v25 }
 0x15d   : > { %v1378_v42 = vpop.f32.mrf.mxu0  ;;  %v1835_v57 = vmul.f32 %v1312_v15, %v672_v4 }
 0x15e   : > { %v746_v43 = vmul.f32 0.044715, %v730_v32  ;;  %v728_v44 = vmul.f32 %v712_v33, %v1800_v2  ;;  %v715_v48 = vmul.f32 %v1806_v34, %v1806_v34  ;;  %v1816_v49 = vadd.f32 %v681_v14, %v550_v35 }
 0x15f   : > { %v571_v55 = vadd.f32 %v1378_v42, %v1792_v18  ;;  %v562_v5 = vpop.f32.mrf.mxu0 }
 0x160   : > { %v762_v6 = vadd.f32 %v746_v43, %v1795_v59  ;;  %v731_v7 = vmul.f32 %v715_v48, %v1806_v34  ;;  %v713_v9 = vmul.f32 %v1816_v49, %v1816_v49  ;;  %v563_v10 = vadd.f32 %v1792_v18, %v562_v5 }
 0x161   : > { %v1830_v16 = vadd.f32 %v686_v36, %v571_v55  ;;  %v1379_v19 = vpop.f32.mrf.mxu0  ;;  %v744_v21 = vmul.f32 0.044715, %v728_v44 }
 0x162   : > { %v778_v23 = vmul.f32 0.7978846, %v762_v6  ;;  %v747_v22 = vmul.f32 0.044715, %v731_v7  ;;  %v729_v56 = vmul.f32 %v713_v9, %v1816_v49  ;;  %v1833_v24 = vadd.f32 %v684_v17, %v563_v10 }
 0x163   : > { %v718_v58 = vmul.f32 %v1830_v16, %v1830_v16  ;;  %v574_v62 = vadd.f32 %v1379_v19, %v1792_v18  ;;  %v565_v63 = vpop.f32.mrf.mxu0  ;;  %v760_v0 = vadd.f32 %v744_v21, %v1800_v2 }
 0x164   : > { %1456 = vtanh.f32 %v778_v23  ;;  %v763_v1 = vadd.f32 %v747_v22, %v1806_v34  ;;  %v716_v11 = vmul.f32 %v1833_v24, %v1833_v24  ;;  %v566_v14 = vadd.f32 %v1792_v18, %v565_v63 }
 0x165   : > { %v734_v17 = vmul.f32 %v718_v58, %v1830_v16  ;;  %v1846_v15 = vadd.f32 %v687_v37, %v574_v62  ;;  %v1382_v25 = vpop.f32.mrf.mxu0  ;;  %v745_v32 = vmul.f32 0.044715, %v729_v56  ;;  %v776_v33 = vmul.f32 0.7978846, %v760_v0 }
 0x166   : > { %v779_v35 = vmul.f32 0.7978846, %v763_v1  ;;  %v732_v36 = vmul.f32 %v716_v11, %v1833_v24  ;;  %v1849_v42 = vadd.f32 %v685_v20, %v566_v14  ;;  %v587_v43 = vadd.f32 %v1382_v25, %v1792_v18 }
 0x167   : > { %v750_v44 = vmul.f32 0.044715, %v734_v17  ;;  %v719_v45 = vmul.f32 %v1846_v15, %v1846_v15  ;;  %v578_v48 = vpop.f32.mrf.mxu0  ;;  %v761_v55 = vadd.f32 %v745_v32, %v1816_v49  ;;  %1458 = vtanh.f32 %v776_v33 }
 0x168   : > { %1460 = vtanh.f32 %v779_v35  ;;  %v748_v37 = vmul.f32 0.044715, %v732_v36  ;;  %v717_v5 = vmul.f32 %v1849_v42, %v1849_v42  ;;  %v1857_v6 = vadd.f32 %v690_v50, %v587_v43 }
 0x169   : > { %v766_v20 = vadd.f32 %v750_v44, %v1830_v16  ;;  %v735_v4 = vmul.f32 %v719_v45, %v1846_v15  ;;  %v579_v7 = vadd.f32 %v1792_v18, %v578_v48  ;;  %v1383_v9 = vpop.f32.mrf.mxu0  ;;  %v777_v10 = vmul.f32 0.7978846, %v761_v55 }
 0x16a   : > { %v764_v19 = vadd.f32 %v748_v37, %v1833_v24  ;;  %v733_v21 = vmul.f32 %v717_v5, %v1849_v42  ;;  %v722_v23 = vmul.f32 %v1857_v6, %v1857_v6  ;;  %v590_v22 = vadd.f32 %v1383_v9, %v1792_v18 }
 0x16b   : > { %v782_v56 = vmul.f32 0.7978846, %v766_v20  ;;  %v751_v50 = vmul.f32 0.044715, %v735_v4  ;;  %v1868_v58 = vadd.f32 %v1809_v40, %v579_v7  ;;  %v581_v62 = vpop.f32.mrf.mxu0  ;;  %1462 = vtanh.f32 %v777_v10 }
 0x16c   : > { %v780_v63 = vmul.f32 0.7978846, %v764_v19  ;;  %v749_v0 = vmul.f32 0.044715, %v733_v21  ;;  %v738_v1 = vmul.f32 %v722_v23, %v1857_v6  ;;  %v1871_v11 = vadd.f32 %v691_v51, %v590_v22 }
 0x16d   : > { %1464 = vtanh.f32 %v782_v56  ;;  %v767_v14 = vadd.f32 %v751_v50, %v1846_v15  ;;  %v720_v17 = vmul.f32 %v1868_v58, %v1868_v58  ;;  %v582_v25 = vadd.f32 %v1792_v18, %v581_v62  ;;  %v1386_v32 = vpop.f32.mrf.mxu0 }
 0x16e   : > { %1466 = vtanh.f32 %v780_v63  ;;  %v765_v40 = vadd.f32 %v749_v0, %v1849_v42  ;;  %v754_v33 = vmul.f32 0.044715, %v738_v1  ;;  %v723_v35 = vmul.f32 %v1871_v11, %v1871_v11 }
 0x16f   : > { %v783_v36 = vmul.f32 0.7978846, %v767_v14  ;;  %v736_v51 = vmul.f32 %v720_v17, %v1868_v58  ;;  %v1882_v43 = vadd.f32 %v1811_v41, %v582_v25  ;;  %v603_v44 = vadd.f32 %v1386_v32, %v1792_v18  ;;  %v594_v45 = vpop.f32.mrf.mxu0 }
 0x170   : > { %v781_v48 = vmul.f32 0.7978846, %v765_v40  ;;  %v770_v55 = vadd.f32 %v754_v33, %v1857_v6  ;;  %v739_v37 = vmul.f32 %v723_v35, %v1871_v11  ;;  %v595_v5 = vadd.f32 %v1792_v18, %v594_v45 }
 0x171   : > { %v1457_v20 = vpop.eup %1456  ;;  %1468 = vtanh.f32 %v783_v36  ;;  %v752_v4 = vmul.f32 0.044715, %v736_v51  ;;  %v721_v7 = vmul.f32 %v1882_v43, %v1882_v43  ;;  %v1891_v9 = vadd.f32 %v1828_v13, %v603_v44  ;;  %v1387_v41 = vpop.f32.mrf.mxu0 }
 0x172   : > { %1470 = vtanh.f32 %v781_v48  ;;  %v786_v10 = vmul.f32 0.7978846, %v770_v55  ;;  %v755_v19 = vmul.f32 0.044715, %v739_v37  ;;  %v1894_v21 = vadd.f32 %v1818_v52, %v595_v5 }
 0x173   : > { %v768_v23 = vadd.f32 %v752_v4, %v1868_v58  ;;  %v737_v22 = vmul.f32 %v721_v7, %v1882_v43  ;;  %v726_v56 = vmul.f32 %v1891_v9, %v1891_v9  ;;  %v606_v50 = vadd.f32 %v1387_v41, %v1792_v18  ;;  %v597_v62 = vpop.f32.mrf.mxu0 }
 0x174   : > { %v1459_v63 = vpop.eup %1458  ;;  %1472 = vtanh.f32 %v786_v10  ;;  %v771_v13 = vadd.f32 %v755_v19, %v1871_v11  ;;  %v724_v0 = vmul.f32 %v1894_v21, %v1894_v21  ;;  %v598_v52 = vadd.f32 %v1792_v18, %v597_v62 }
 0x175   : > { %v1461_v1 = vpop.eup %1460  ;;  %v784_v14 = vmul.f32 0.7978846, %v768_v23  ;;  %v753_v17 = vmul.f32 0.044715, %v737_v22  ;;  %v742_v25 = vmul.f32 %v726_v56, %v1891_v9  ;;  %v1907_v32 = vadd.f32 %v1835_v57, %v606_v50 }
 0x176   : > { %v787_v40 = vmul.f32 0.7978846, %v771_v13  ;;  %v740_v33 = vmul.f32 %v724_v0, %v1894_v21  ;;  %v1911_v35 = vadd.f32 %v1826_v12, %v598_v52  ;;  %v808_v36 = vadd.f32 1.0, %v1459_v63 }
 0x177   : > { %1474 = vtanh.f32 %v784_v14  ;;  %v769_v51 = vadd.f32 %v753_v17, %v1882_v43  ;;  %v758_v44 = vmul.f32 0.044715, %v742_v25  ;;  %v727_v18 = vmul.f32 %v1907_v32, %v1907_v32 }
 0x178   : > { %v1463_v45 = vpop.eup %1462  ;;  %1476 = vtanh.f32 %v787_v40  ;;  %v756_v48 = vmul.f32 0.044715, %v740_v33  ;;  %v725_v57 = vmul.f32 %v1911_v35, %v1911_v35  ;;  %v824_v55 = vmul.f32 0.5, %v808_v36 }
 0x179   : > { %v785_v37 = vmul.f32 0.7978846, %v769_v51  ;;  %v774_v5 = vadd.f32 %v758_v44, %v1891_v9  ;;  %v743_v12 = vmul.f32 %v727_v18, %v1907_v32  ;;  %v809_v4 = vadd.f32 1.0, %v1463_v45 }
 0x17a   : > { %v1465_v7 = vpop.eup %1464  ;;  %v772_v41 = vadd.f32 %v756_v48, %v1894_v21  ;;  %v741_v10 = vmul.f32 %v725_v57, %v1911_v35  ;;  %v840_v19 = vmul.f32 %v824_v55, %v1800_v2  ;;  %v810_v23 = vadd.f32 1.0, %v1457_v20 }
 0x17b   : > { %v1467_v22 = vpop.eup %1466  ;;  %1478 = vtanh.f32 %v785_v37  ;;  %v790_v56 = vmul.f32 0.7978846, %v774_v5  ;;  %v759_v50 = vmul.f32 0.044715, %v743_v12  ;;  %v825_v62 = vmul.f32 0.5, %v809_v4 }
 0x17c   : > { %v788_v63 = vmul.f32 0.7978846, %v772_v41  ;;  %v757_v13 = vmul.f32 0.044715, %v741_v10  ;;  %v811_v0 = vadd.f32 1.0, %v1461_v1  ;;  %v826_v52 = vmul.f32 0.5, %v810_v23 }
 0x17d   : > { %1480 = vtanh.f32 %v790_v56  ;;  %v775_v14 = vadd.f32 %v759_v50, %v1907_v32  ;;  %v841_v17 = vmul.f32 %v825_v62, %v1816_v49  ;;  %v812_v25 = vadd.f32 1.0, %v1467_v22 }
 0x17e   : > { %v1469_v40 = vpop.eup %1468  ;;  %1482 = vtanh.f32 %v788_v63  ;;  %v773_v2 = vadd.f32 %v757_v13, %v1911_v35  ;;  %v827_v20 = vmul.f32 0.5, %v811_v0  ;;  %v842_v33 = vmul.f32 %v826_v52, %v1795_v59 }
 0x17f   : > { %v1471_v36 = vpop.eup %1470  ;;  %v791_v51 = vmul.f32 0.7978846, %v775_v14  ;;  %v856_v44 = vpack.c.bf16 %v841_v17, %v840_v19  ;;  %v828_v18 = vmul.f32 0.5, %v812_v25  ;;  %v814_v45 = vadd.f32 1.0, %v1465_v7 }
 0x180   : > { %v789_v1 = vmul.f32 0.7978846, %v773_v2  ;;  %v843_v48 = vmul.f32 %v827_v20, %v1806_v34  ;;  %v813_v57 = vadd.f32 1.0, %v1471_v36  ;;  %v815_v55 = vadd.f32 1.0, %v1469_v40 }
 0x181   : > { %v1473_v37 = vpop.eup %1472  ;;  %1484 = vtanh.f32 %v791_v51  ;;  %1404 = vmatprep.mubr.bf16.mxu1 %v856_v44  ;;  %v844_v59 = vmul.f32 %v828_v18, %v1833_v24  ;;  %v830_v10 = vmul.f32 0.5, %v814_v45 }
 0x182   : > { %1486 = vtanh.f32 %v789_v1  ;;  %v857_v49 = vpack.c.bf16 %v843_v48, %v842_v33  ;;  %v829_v5 = vmul.f32 0.5, %v813_v57  ;;  %v831_v12 = vmul.f32 0.5, %v815_v55 }
 0x183   : > { %v846_v50 = vmul.f32 %v830_v10, %v1830_v16  ;;  %v818_v62 = vadd.f32 1.0, %v1473_v37 }
 0x184   : > { %v1475_v4 = vpop.eup %1474  ;;  %1405 = vmatmul.mubr.bf16.vlgmr.msra.gmra.mxu1 %v857_v49  ;;  %v845_v41 = vmul.f32 %v829_v5, %v1849_v42  ;;  %v847_v34 = vmul.f32 %v831_v12, %v1846_v15  ;;  %v1034_v5 = vpop.permute.xlu1 %1033 }
 0x185   : > { %v1477_v7 = vpop.eup %1476  ;;  %v816_v19 = vadd.f32 1.0, %v1475_v4  ;;  %v834_v42 = vmul.f32 0.5, %v818_v62 }
 0x186   : > { %v858_v23 = vpack.c.bf16 %v845_v41, %v844_v59  ;;  %v819_v22 = vadd.f32 1.0, %v1477_v7  ;;  %v859_v52 = vpack.c.bf16 %v847_v34, %v846_v50  ;;  %v1038_v59 = vpop.permute.xlu0 %1037 }
 0x187   : > { %v832_v13 = vmul.f32 0.5, %v816_v19  ;;  %v850_v51 = vmul.f32 %v834_v42, %v1857_v6 }
 0x188   : > { %v1479_v56 = vpop.eup %1478  ;;  %1408 = vmatprep.mubr.bf16.mxu1 %v858_v23  ;;  %v835_v14 = vmul.f32 0.5, %v819_v22  ;;  %v1042_v12 = vpop.permute.xlu1 %1041 }
 0x189   : > { %v817_v63 = vadd.f32 1.0, %v1479_v56  ;;  %v848_v40 = vmul.f32 %v832_v13, %v1868_v58 }
 0x18a   : > { %v1481_v0 = vpop.eup %1480  ;;  %v851_v20 = vmul.f32 %v835_v14, %v1871_v11  ;;  %v1050_v10 = vpop.permute.xlu0 %1049  ;;  %v1961_v14 = vld [vmem:[%s2035_s6] ss:$0 sm:$0xff] }
 0x18b   : > { %v1483_v24 = vpop.eup %1482  ;;  %v833_v17 = vmul.f32 0.5, %v817_v63  ;;  %v822_v45 = vadd.f32 1.0, %v1481_v0 }
 0x18c   : > { %1409 = vmatmul.mubr.bf16.gmra.mxu1 %v859_v52  ;;  %v820_v25 = vadd.f32 1.0, %v1483_v24  ;;  %v861_v1 = vpack.c.bf16 %v851_v20, %v850_v51  ;;  %v1046_v4 = vpop.permute.xlu1 %1045 }
 0x18d   : > { %v849_v15 = vmul.f32 %v833_v17, %v1882_v43  ;;  %v838_v55 = vmul.f32 0.5, %v822_v45 }
 0x18e   : > { %v1485_v2 = vpop.eup %1484  ;;  %v836_v18 = vmul.f32 0.5, %v820_v25 }
 0x18f   : > { %v1487_v33 = vpop.eup %1486  ;;  %v860_v16 = vpack.c.bf16 %v849_v15, %v848_v40  ;;  %v823_v36 = vadd.f32 1.0, %v1485_v2  ;;  %v854_v49 = vmul.f32 %v838_v55, %v1891_v9 }
 0x190   : > { %v821_v44 = vadd.f32 1.0, %v1487_v33  ;;  %v852_v58 = vmul.f32 %v836_v18, %v1894_v21  ;;  %v1940_v41 = vpop.permute.xlu1 %1053  ;;  %v1058_v21 = vpop.permute.xlu0 %1057 }
 0x191   : > { %1412 = vmatprep.mubr.bf16.mxu1 %v860_v16  ;;  %v839_v57 = vmul.f32 0.5, %v823_v36 }
 0x192   : > { %v837_v48 = vmul.f32 0.5, %v821_v44 }
 0x193   : > { %v855_v11 = vmul.f32 %v839_v57, %v1907_v32 }
 0x194   : > { %1413 = vmatmul.mubr.bf16.gmra.mxu1 %v861_v1  ;;  %v853_v43 = vmul.f32 %v837_v48, %v1911_v35  ;;  %v1062_v7 = vpop.permute.xlu1 %1061  ;;  %v1944_v35 = vpop.permute.xlu0 %1065 }
 0x195   : > { %v863_v6 = vpack.c.bf16 %v855_v11, %v854_v49 }
 0x196   : > { %v862_v37 = vpack.c.bf16 %v853_v43, %v852_v58 }
 0x198   : > { %1416 = vmatprep.mubr.bf16.mxu1 %v862_v37  ;;  %v1942_v19 = vpop.permute.xlu1 %1069  ;;  %v1948_v32 = vpop.permute.xlu0 %1073 }
 0x19c   : > { %1417 = vmatmul.mubr.bf16.gmra.mxu1 %v863_v6  ;;  %v1946_v23 = vpop.permute.xlu1 %1077  ;;  %v1952_v34 = vpop.permute.xlu0 %1081 }
 0x1a0   : > { %v1950_v9 = vpop.permute.xlu1 %1085  ;;  %v1956_v56 = vpop.permute.xlu0 %1089 }
 0x1a4   : > { %v1954_v22 = vpop.permute.xlu1 %1093  ;;  %v1114_v62 = vpop.permute.xlu0 %1113 }
 0x1a5   : > { %v1176_v15 = vmul.f32 %v1114_v62, %v1670_v29 }
 0x1a8   : > { %v1118_v50 = vpop.permute.xlu1 %1117  ;;  %v1126_v13 = vpop.permute.xlu0 %1125 }
 0x1a9   : > { %v1179_v29 = vmul.f32 %v1126_v13, %v1673_v30  ;;  %v1177_v58 = vmul.f32 %v1118_v50, %v1676_v31 }
 0x1ac   : > { %v1122_v63 = vpop.permute.xlu1 %1121  ;;  %v1134_v52 = vpop.permute.xlu0 %1133 }
 0x1ad   : > { %v1178_v42 = vmul.f32 %v1122_v63, %v1667_v28 }
 0x1b0   : > { %v1130_v0 = vpop.permute.xlu1 %1129  ;;  %v1142_v33 = vpop.permute.xlu0 %1141 }
 0x1b1   : > { %v1180_v31 = vmul.f32 %v1130_v0, %v1686_v39 }
 0x1b4   : > { %v1138_v24 = vpop.permute.xlu1 %1137  ;;  %v1150_v11 = vpop.permute.xlu0 %1149 }
 0x1b5   : > { %v1182_v6 = vmul.f32 %v1138_v24, %v1694_v47 }
 0x1b8   : > { %v1146_v44 = vpop.permute.xlu1 %1145 }
 0x244   : > { %v1406_v17 = vpop.f32.mrf.mxu1 }
 0x245   : > { %v978_v25 = vadd.f32 %v1406_v17, %v1961_v14  ;;  %v1183_v17 = vmul.f32 %v1142_v33, %v1691_v46 }
 0x246   : > { %v969_v40 = vpop.f32.mrf.mxu1 }
 0x247   : > { %v1098_v2 = vmul.f32 %v1042_v12, %v978_v25  ;;  %v970_v20 = vadd.f32 %v1961_v14, %v969_v40  ;;  %v1181_v40 = vmul.f32 %v1134_v52, %v1683_v38  ;;  %v1184_v38 = vmul.f32 %v1146_v44, %v1702_v54 }
 0x248   : > { %v1407_v16 = vpop.f32.mrf.mxu1  ;;  %v1185_v44 = vmul.f32 %v1150_v11, %v1699_v53 }
 0x249   : > { %v1194_v36 = vadd.f32 %v1178_v42, %v1098_v2  ;;  %v1096_v51 = vmul.f32 %v1034_v5, %v970_v20  ;;  %v981_v28 = vadd.f32 %v1407_v16, %v1961_v14  ;;  %v1158_v42 = vpop.permute.xlu0 %1157 }
 0x24a   : > { %v972_v18 = vpop.f32.mrf.mxu1 }
 0x24b   : > { %1210 = vst [vmem:[%s1971_s9 + $0x10] sm:$0xff] %v1194_v36  ;;  %v1192_v45 = vadd.f32 %v1176_v15, %v1096_v51  ;;  %v1099_v1 = vmul.f32 %v1046_v4, %v981_v28  ;;  %v973_v48 = vadd.f32 %v1961_v14, %v972_v18  ;;  %v1154_v4 = vpop.permute.xlu1 %1153 }
 0x24c   : > { %v1410_v57 = vpop.f32.mrf.mxu1  ;;  %v1186_v46 = vmul.f32 %v1154_v4, %v1710_v61  ;;  %v1187_v61 = vmul.f32 %v1158_v42, %v1707_v60 }
 0x24d   : > { %1208 = vst [vmem:[%s1971_s9] sm:$0xff] %v1192_v45  ;;  %v1195_v43 = vadd.f32 %v1179_v29, %v1099_v1  ;;  %v1097_v55 = vmul.f32 %v1038_v59, %v973_v48  ;;  %v994_v37 = vadd.f32 %v1410_v57, %v1961_v14  ;;  %v1166_v51 = vpop.permute.xlu0 %1165 }
 0x24e   : > { %v985_v49 = vpop.f32.mrf.mxu1 }
 0x24f   : > { %1211 = vst [vmem:[%s1971_s9 + $0x18] sm:$0xff] %v1195_v43  ;;  %v1193_v30 = vadd.f32 %v1177_v58, %v1097_v55  ;;  %v1102_v5 = vmul.f32 %v1058_v21, %v994_v37  ;;  %v986_v12 = vadd.f32 %v1961_v14, %v985_v49  ;;  %v1162_v15 = vpop.permute.xlu1 %1161 }
 0x250   : > { %v1411_v62 = vpop.f32.mrf.mxu1  ;;  %v1188_v53 = vmul.f32 %v1162_v15, %v1718_v8 }
 0x251   : > { %1209 = vst [vmem:[%s1971_s9 + $0x8] sm:$0xff] %v1193_v30  ;;  %v1198_v50 = vadd.f32 %v1182_v6, %v1102_v5  ;;  %v1100_v59 = vmul.f32 %v1050_v10, %v986_v12  ;;  %v997_v63 = vadd.f32 %v1411_v62, %v1961_v14  ;;  %v1174_v55 = vpop.permute.xlu0 %1173  ;;  %v1189_v12 = vmul.f32 %v1166_v51, %v1715_v3 }
 0x252   : > { %v988_v13 = vpop.f32.mrf.mxu1  ;;  %v1191_v6 = vmul.f32 %v1174_v55, %v1723_v26 }
 0x253   : > { %1214 = vst [vmem:[%s1971_s9 + $0x30] sm:$0xff] %v1198_v50  ;;  %v1196_v47 = vadd.f32 %v1180_v31, %v1100_v59  ;;  %v1103_v24 = vmul.f32 %v1062_v7, %v997_v63  ;;  %v989_v21 = vadd.f32 %v1961_v14, %v988_v13  ;;  %v1170_v45 = vpop.permute.xlu1 %1169 }
 0x254   : > { %v1414_v25 = vpop.f32.mrf.mxu1  ;;  %v1190_v60 = vmul.f32 %v1170_v45, %v1726_v27 }
 0x255   : > { %1212 = vst [vmem:[%s1971_s9 + $0x20] sm:$0xff] %v1196_v47  ;;  %v1199_v39 = vadd.f32 %v1183_v17, %v1103_v24  ;;  %v1101_v10 = vmul.f32 %v1940_v41, %v989_v21  ;;  %v1010_v0 = vadd.f32 %v1414_v25, %v1961_v14 }
 0x256   : > { %v1001_v2 = vpop.f32.mrf.mxu1 }
 0x257   : > { %1215 = vst [vmem:[%s1971_s9 + $0x38] sm:$0xff] %v1199_v39  ;;  %v1197_v7 = vadd.f32 %v1181_v40, %v1101_v10  ;;  %v1106_v20 = vmul.f32 %v1948_v32, %v1010_v0  ;;  %v1002_v33 = vadd.f32 %v1961_v14, %v1001_v2 }
 0x258   : > { %v1415_v16 = vpop.f32.mrf.mxu1 }
 0x259   : > { %1213 = vst [vmem:[%s1971_s9 + $0x28] sm:$0xff] %v1197_v7  ;;  %v1202_v52 = vadd.f32 %v1186_v46, %v1106_v20  ;;  %v1104_v41 = vmul.f32 %v1944_v35, %v1002_v33  ;;  %v1013_v36 = vadd.f32 %v1415_v16, %v1961_v14 }
 0x25a   : > { %v1004_v28 = vpop.f32.mrf.mxu1 }
 0x25b   : > { %1218 = vst [vmem:[%s1971_s9 + $0x50] sm:$0xff] %v1202_v52  ;;  %v1200_v18 = vadd.f32 %v1184_v38, %v1104_v41  ;;  %v1107_v32 = vmul.f32 %v1946_v23, %v1013_v36  ;;  %v1005_v29 = vadd.f32 %v1961_v14, %v1004_v28 }
 0x25c   : > { %v1418_v54 = vpop.f32.mrf.mxu1 }
 0x25d   : > { %1216 = vst [vmem:[%s1971_s9 + $0x40] sm:$0xff] %v1200_v18  ;;  %v1203_v35 = vadd.f32 %v1187_v61, %v1107_v32  ;;  %v1105_v1 = vmul.f32 %v1942_v19, %v1005_v29  ;;  %v1026_v48 = vadd.f32 %v1418_v54, %v1961_v14 }
 0x25e   : > { %v1017_v57 = vpop.f32.mrf.mxu1 }
 0x25f   : > { %1219 = vst [vmem:[%s1971_s9 + $0x58] sm:$0xff] %v1203_v35  ;;  %v1201_v58 = vadd.f32 %v1185_v44, %v1105_v1  ;;  %v1110_v23 = vmul.f32 %v1956_v56, %v1026_v48  ;;  %v1018_v43 = vadd.f32 %v1961_v14, %v1017_v57 }
 0x260   : > { %v1419_v37 = vpop.f32.mrf.mxu1 }
 0x261   : > { %1217 = vst [vmem:[%s1971_s9 + $0x48] sm:$0xff] %v1201_v58  ;;  %v1206_v19 = vadd.f32 %v1190_v60, %v1110_v23  ;;  %v1108_v11 = vmul.f32 %v1952_v34, %v1018_v43  ;;  %v1029_v49 = vadd.f32 %v1419_v37, %v1961_v14 }
 0x262   : > { %v1020_v27 = vpop.f32.mrf.mxu1 }
 0x263   : > { %1222 = vst [vmem:[%s1971_s9 + $0x70] sm:$0xff] %v1206_v19  ;;  %v1204_v56 = vadd.f32 %v1188_v53, %v1108_v11  ;;  %v1111_v30 = vmul.f32 %v1954_v22, %v1029_v49  ;;  %v1021_v5 = vadd.f32 %v1961_v14, %v1020_v27 }
 0x265   : > { %1220 = vst [vmem:[%s1971_s9 + $0x60] sm:$0xff] %v1204_v56  ;;  %v1207_v8 = vadd.f32 %v1191_v6, %v1111_v30  ;;  %v1109_v4 = vmul.f32 %v1950_v9, %v1021_v5 }
 0x267   : > { %1223 = vst [vmem:[%s1971_s9 + $0x78] sm:$0xff] %v1207_v8  ;;  %v1205_v62 = vadd.f32 %v1189_v12, %v1109_v4 }
 0x269   : > { %1221 = vst [vmem:[%s1971_s9 + $0x68] sm:$0xff] %v1205_v62 }
 0x26a PF: > { %s17_s24 = sadd.s32 1, %s1494_s24  }
 0x26b   : > { %p14_p4 = scmp.ge.s32.totalorder %s17_s24, 4  }
 0x26d   :  { %16 = sbr.rel (!%p14_p4) target bundleno = 1 (0x1), region = 81 }

</bundles_post_ra>
